<compile_context>
chip_gen: v5e
topology: v5e:2x2
jax: 0.10.0
libtpu: 0.0.40
codegen_flags: <defaults>
</compile_context>

<pallas_src>
import functools

import jax
import jax.numpy as jnp
from jax import lax
from jax.experimental import pallas as pl
from jax.experimental.pallas import tpu as pltpu

_SUBLANES = 8
_LANES = 128


# ---------------------------------------------------------------------------
# kernel
# ---------------------------------------------------------------------------
def _ban_kernel(*refs, n_valid, soft_mode, label_exponent, inv_temperature,
                needs_mask):
    """One row-block of the fused distillation loss.

    soft_mode: "probs"   -> soft labels are [blk, C] probabilities (label_type='soft')
               "indices" -> soft labels are [blk, 1] class indices (label_type='hard')
               "none"    -> eval mode, hard CE only
    Outputs are per-block partial sums broadcast into a lane-dense (1,8,128) tile.
    """
    if soft_mode == "none":
        logits_ref, hard_ref, hard_out_ref = refs
        soft_ref = soft_out_ref = None
    else:
        logits_ref, hard_ref, soft_ref, hard_out_ref, soft_out_ref = refs

    logits = logits_ref[...].astype(jnp.float32)          # (blk, C)
    blk, c = logits.shape

    # Numerically-stable log-softmax pieces.  logp is never materialised:
    #   CE(p, logits) = lse - sum_j p_j * z_j     (since sum_j p_j == 1)
    m = jnp.max(logits, axis=-1, keepdims=True)
    z = logits - m
    lse = jnp.log(jnp.sum(jnp.exp(z), axis=-1, keepdims=True))   # (blk, 1)

    col = lax.broadcasted_iota(jnp.int32, (blk, c), 1)

    def picked(zz, lab_ref):
        # zz[i, lab[i]] via lane-iota compare (replaces the one-hot stream).
        lab = lab_ref[...].astype(jnp.int32)               # (blk, 1)
        return jnp.sum(jnp.where(col == lab, zz, 0.0), axis=-1, keepdims=True)

    hard_ce = lse - picked(z, hard_ref)                    # (blk, 1)

    if soft_mode == "probs":
        soft = soft_ref[...].astype(jnp.float32)
        # pow(0, e) lowers to exp(e * log(0)) = 0 for e > 0 -> no NaNs.
        w = jnp.power(soft, label_exponent) if label_exponent != 1.0 else soft
        den = jnp.sum(w, axis=-1, keepdims=True)           # (blk, 1)
        wz = jnp.sum(w * z, axis=-1, keepdims=True)        # (blk, 1)
        # sum_j (w_j/den) * -(z_j - lse) == lse - wz/den  (per-row scalar divide)
        soft_ce = lse - wz / jnp.maximum(den, 1e-30)
    elif soft_mode == "indices":
        # CE(logits / T, idx): reuse the row max (max(x/T) = max(x)/T -> z/T).
        zs = z * inv_temperature
        lse_s = jnp.log(jnp.sum(jnp.exp(zs), axis=-1, keepdims=True))
        soft_ce = lse_s - picked(zs, soft_ref)
    else:
        soft_ce = None

    if needs_mask:
        row = pl.program_id(0) * blk + lax.broadcasted_iota(jnp.int32, (blk, 1), 0)
        mask = (row < n_valid).astype(jnp.float32)
        hard_ce = hard_ce * mask
        if soft_ce is not None:
            soft_ce = soft_ce * mask

    hard_out_ref[...] = jnp.full(hard_out_ref.shape, jnp.sum(hard_ce), jnp.float32)
    if soft_ce is not None:
        soft_out_ref[...] = jnp.full(soft_out_ref.shape, jnp.sum(soft_ce), jnp.float32)


# ---------------------------------------------------------------------------
# wrapper / launch
# ---------------------------------------------------------------------------
def _pad_rows(x, pad):
    if pad == 0:
        return x
    return jnp.pad(x, ((0, pad),) + ((0, 0),) * (x.ndim - 1))


def _choose_block_rows(n, c, stream_bytes_per_row):
    """Largest row-block (multiple of 8) whose double-buffered streams fit VMEM."""
    try:
        cap = int(pltpu.get_tpu_info().vmem_capacity_bytes)
    except Exception:  # pragma: no cover - conservative fallback (v7x-sized)
        cap = 64 * 1024 * 1024
    budget = (cap * 3) // 4                      # headroom for outputs/scratch
    blk = (budget - (2 << 20)) // max(1, 2 * stream_bytes_per_row)
    blk = max(_SUBLANES, min(1024, (blk // _SUBLANES) * _SUBLANES))
    n_pad8 = ((n + _SUBLANES - 1) // _SUBLANES) * _SUBLANES
    blk = min(blk, max(_SUBLANES, n_pad8))
    return blk, budget


def _run(logits, hard_idx, soft_arr, *, soft_mode, temperature, block_rows=None):
    n, c = logits.shape

    stream_bytes = logits.dtype.itemsize * c
    if soft_mode == "probs":
        stream_bytes += soft_arr.dtype.itemsize * c
    blk, vmem_limit = _choose_block_rows(n, c, stream_bytes)
    if block_rows is not None:                   # testing / manual override
        blk = min(blk, max(_SUBLANES, (int(block_rows) // _SUBLANES) * _SUBLANES))

    n_pad = pl.cdiv(n, blk) * blk
    grid_n = n_pad // blk
    inv_t = 1.0 / float(temperature)

    kernel = functools.partial(
        _ban_kernel,
        n_valid=n,
        soft_mode=soft_mode,
        label_exponent=inv_t,
        inv_temperature=inv_t,
        needs_mask=(n_pad != n),
    )

    in_arrays = [_pad_rows(logits, n_pad - n), _pad_rows(hard_idx, n_pad - n)]
    in_specs = [pl.BlockSpec((blk, c), lambda i: (i, 0)),
                pl.BlockSpec((blk, 1), lambda i: (i, 0))]
    if soft_mode == "probs":
        in_arrays.append(_pad_rows(soft_arr, n_pad - n))
        in_specs.append(pl.BlockSpec((blk, c), lambda i: (i, 0)))
    elif soft_mode == "indices":
        in_arrays.append(_pad_rows(soft_arr, n_pad - n))
        in_specs.append(pl.BlockSpec((blk, 1), lambda i: (i, 0)))

    part_shape = jax.ShapeDtypeStruct((grid_n, _SUBLANES, _LANES), jnp.float32)
    part_spec = pl.BlockSpec((1, _SUBLANES, _LANES), lambda i: (i, 0, 0))
    if soft_mode == "none":
        out_shape, out_specs = part_shape, part_spec
    else:
        out_shape, out_specs = (part_shape, part_shape), (part_spec, part_spec)

    outs = pl.pallas_call(
        kernel,
        grid=(grid_n,),
        in_specs=in_specs,
        out_specs=out_specs,
        out_shape=out_shape,
        compiler_params=pltpu.CompilerParams(
            dimension_semantics=("parallel",),
            vmem_limit_bytes=int(vmem_limit),
        ),
    )(*in_arrays)

    inv_n = 1.0 / n
    if soft_mode == "none":
        return jnp.sum(outs[:, 0, 0]) * inv_n
    hard_part, soft_part = outs
    return jnp.sum(hard_part[:, 0, 0]) * inv_n, jnp.sum(soft_part[:, 0, 0]) * inv_n


def ban_distill_loss(logits, hard_label, soft_label=None, *, temperature,
                     running_mode='training', label_type='soft', block_rows=None):
    """JAX/Pallas equivalent of BanDistillLoss.forward.

    logits:      [N, C] float (any float dtype; streamed natively)
    hard_label:  [N]    int class indices
    soft_label:  [N, C] float probabilities   (label_type == 'soft')
                 [N]    int class indices     (label_type != 'soft')
    """
    n, c = logits.shape
    hard_idx = jnp.asarray(hard_label, jnp.int32).reshape(n, 1)

    if running_mode == 'training':
        if label_type == 'soft':
            hard_loss, soft_loss = _run(
                logits, hard_idx, soft_label,
                soft_mode="probs", temperature=temperature, block_rows=block_rows)
        else:
            soft_idx = jnp.asarray(soft_label, jnp.int32).reshape(n, 1)
            hard_loss, soft_loss = _run(
                logits, hard_idx, soft_idx,
                soft_mode="indices", temperature=temperature, block_rows=block_rows)
        return (soft_loss, hard_loss, soft_loss, 0.0)
    else:
        # eval: hard CE only, no soft stream / soft compute at all.
        return _run(logits, hard_idx, None,
                    soft_mode="none", temperature=temperature, block_rows=block_rows)


# ---------------------------------------------------------------------------
# self-test
# ---------------------------------------------------------------------------
if __name__ == "__main__":
    key = jax.random.PRNGKey(0)
    k1, k2, k3, k4 = jax.random.split(key, 4)
    temperature = 2.0

    # ---- case 1: soft-label training (single block) -----------------------
    N, C = 8, 128
    logits = jax.random.normal(k1, (N, C), dtype=jnp.float32)
    hard_label = jax.random.randint(k2, (N,), 0, C)
    soft_label = jax.nn.softmax(jax.random.normal(k3, (N, C), dtype=jnp.float32), -1)

    out = jax.block_until_ready(
        ban_distill_loss(logits, hard_label, soft_label,
                         temperature=temperature,
                         running_mode='training', label_type='soft'))
    soft_loss, hard_loss, _, zero = out

    logp = jax.nn.log_softmax(logits, axis=-1)
    ref_hard = jnp.mean(-jnp.take_along_axis(logp, hard_label[:, None], axis=-1))
    s = jnp.power(soft_label, 1.0 / temperature)
    s = s / jnp.sum(s, axis=-1, keepdims=True)
    ref_soft = jnp.mean(jnp.sum(s * -logp, axis=-1))
    assert jnp.allclose(hard_loss, ref_hard, atol=1e-5, rtol=1e-4)
    assert jnp.allclose(soft_loss, ref_soft, atol=1e-5, rtol=1e-4)
    assert zero == 0.0

    # ---- case 2: soft-label training, multi-block grid + row masking ------
    N2, C2 = 20, 256
    logits2 = jax.random.normal(k4, (N2, C2), dtype=jnp.float32)
    hard2 = jax.random.randint(k2, (N2,), 0, C2)
    soft2 = jax.nn.softmax(jax.random.normal(k3, (N2, C2), dtype=jnp.float32), -1)
    out2 = jax.block_until_ready(
        ban_distill_loss(logits2, hard2, soft2, temperature=temperature,
                         running_mode='training', label_type='soft',
                         block_rows=8))   # force blk=8 -> grid of 3, padded rows
    soft2_l, hard2_l, _, _ = out2
    logp2 = jax.nn.log_softmax(logits2, axis=-1)
    ref_hard2 = jnp.mean(-jnp.take_along_axis(logp2, hard2[:, None], axis=-1))
    s2 = jnp.power(soft2, 1.0 / temperature)
    s2 = s2 / jnp.sum(s2, axis=-1, keepdims=True)
    ref_soft2 = jnp.mean(jnp.sum(s2 * -logp2, axis=-1))
    assert jnp.allclose(hard2_l, ref_hard2, atol=1e-5, rtol=1e-4)
    assert jnp.allclose(soft2_l, ref_soft2, atol=1e-5, rtol=1e-4)

    # ---- case 3: hard-label training (soft labels are class indices) ------
    soft_idx = jax.random.randint(k3, (N,), 0, C)
    out3 = jax.block_until_ready(
        ban_distill_loss(logits, hard_label, soft_idx, temperature=temperature,
                         running_mode='training', label_type='hard'))
    soft3_l, hard3_l, _, _ = out3
    logp_t = jax.nn.log_softmax(logits / temperature, axis=-1)
    ref_soft3 = jnp.mean(-jnp.take_along_axis(logp_t, soft_idx[:, None], axis=-1))
    assert jnp.allclose(hard3_l, ref_hard, atol=1e-5, rtol=1e-4)
    assert jnp.allclose(soft3_l, ref_soft3, atol=1e-5, rtol=1e-4)

    # ---- case 4: eval mode (hard CE only) ----------------------------------
    eval_loss = jax.block_until_ready(
        ban_distill_loss(logits, hard_label, soft_label,
                         temperature=temperature, running_mode='eval'))
    assert jnp.allclose(eval_loss, ref_hard, atol=1e-5, rtol=1e-4)

    print("KERNEL_OK")
</pallas_src>

<mosaic_0001>
module attributes {stable_mosaic.version = 11 : i64} {
  func.func @_ban_kernel(%arg0: i32, %arg1: memref<8x128xf32, #tpu.memory_space<vmem>>, %arg2: memref<8x1xi32, #tpu.memory_space<vmem>>, %arg3: memref<8x128xf32, #tpu.memory_space<vmem>>, %arg4: memref<1x8x128xf32, #tpu.memory_space<vmem>>, %arg5: memref<1x8x128xf32, #tpu.memory_space<vmem>>) attributes {dimension_semantics = [#tpu.dimension_semantics<parallel>], iteration_bounds = array<i64: 1>, scalar_prefetch = 0 : i64, scratch_operands = 0 : i64, tpu.core_type = #tpu.core_type<tc>, window_params = [{transform_indices = @transform_0, window_bounds = array<i64: 8, 128>}, {transform_indices = @transform_1, window_bounds = array<i64: 8, 1>}, {transform_indices = @transform_2, window_bounds = array<i64: 8, 128>}, {transform_indices = @transform_3, window_bounds = array<i64: 1, 8, 128>}, {transform_indices = @transform_4, window_bounds = array<i64: 1, 8, 128>}]} {
    %c0 = arith.constant 0 : index
    %c0_0 = arith.constant 0 : index
    %0 = vector.load %arg1[%c0, %c0_0] : memref<8x128xf32, #tpu.memory_space<vmem>>, vector<8x128xf32>
    %cst = arith.constant dense<0xFF800000> : vector<8xf32>
    %1 = vector.multi_reduction <maximumf>, %0, %cst [1] : vector<8x128xf32> to vector<8xf32>
    %2 = vector.shape_cast %1 : vector<8xf32> to vector<8x1xf32>
    %3 = vector.broadcast %2 : vector<8x1xf32> to vector<8x128xf32>
    %4 = arith.subf %0, %3 : vector<8x128xf32>
    %5 = math.exp %4 : vector<8x128xf32>
    %cst_1 = arith.constant dense<0.000000e+00> : vector<8xf32>
    %6 = vector.multi_reduction <add>, %5, %cst_1 [1] : vector<8x128xf32> to vector<8xf32>
    %7 = vector.shape_cast %6 : vector<8xf32> to vector<8x1xf32>
    %8 = math.log %7 : vector<8x1xf32>
    %9 = tpu.iota {dimensions = array<i32: 1>} : vector<8x128xi32>
    %c0_2 = arith.constant 0 : index
    %c0_3 = arith.constant 0 : index
    %10 = vector.load %arg2[%c0_2, %c0_3] : memref<8x1xi32, #tpu.memory_space<vmem>>, vector<8x1xi32>
    %11 = vector.broadcast %10 : vector<8x1xi32> to vector<8x128xi32>
    %12 = arith.cmpi eq, %9, %11 : vector<8x128xi32>
    %cst_4 = arith.constant 0.000000e+00 : f32
    %13 = vector.broadcast %cst_4 : f32 to vector<8x128xf32>
    %14 = arith.select %12, %4, %13 : vector<8x128xi1>, vector<8x128xf32>
    %cst_5 = arith.constant dense<0.000000e+00> : vector<8xf32>
    %15 = vector.multi_reduction <add>, %14, %cst_5 [1] : vector<8x128xf32> to vector<8xf32>
    %16 = vector.shape_cast %15 : vector<8xf32> to vector<8x1xf32>
    %17 = arith.subf %8, %16 : vector<8x1xf32>
    %c0_6 = arith.constant 0 : index
    %c0_7 = arith.constant 0 : index
    %18 = vector.load %arg3[%c0_6, %c0_7] : memref<8x128xf32, #tpu.memory_space<vmem>>, vector<8x128xf32>
    %cst_8 = arith.constant 5.000000e-01 : f32
    %19 = vector.broadcast %cst_8 : f32 to vector<8x128xf32>
    %20 = math.powf %18, %19 : vector<8x128xf32>
    %cst_9 = arith.constant dense<0.000000e+00> : vector<8xf32>
    %21 = vector.multi_reduction <add>, %20, %cst_9 [1] : vector<8x128xf32> to vector<8xf32>
    %22 = vector.shape_cast %21 : vector<8xf32> to vector<8x1xf32>
    %23 = arith.mulf %20, %4 : vector<8x128xf32>
    %cst_10 = arith.constant dense<0.000000e+00> : vector<8xf32>
    %24 = vector.multi_reduction <add>, %23, %cst_10 [1] : vector<8x128xf32> to vector<8xf32>
    %25 = vector.shape_cast %24 : vector<8xf32> to vector<8x1xf32>
    %cst_11 = arith.constant 1.000000e-30 : f32
    %26 = vector.broadcast %cst_11 : f32 to vector<8x1xf32>
    %27 = arith.maximumf %22, %26 : vector<8x1xf32>
    %28 = arith.divf %25, %27 : vector<8x1xf32>
    %29 = arith.subf %8, %28 : vector<8x1xf32>
    %30 = vector.shape_cast %17 : vector<8x1xf32> to vector<1x8x1xf32>
    %cst_12 = arith.constant dense<0.000000e+00> : vector<1xf32>
    %31 = vector.multi_reduction <add>, %30, %cst_12 [1, 2] : vector<1x8x1xf32> to vector<1xf32>
    %32 = vector.shape_cast %31 : vector<1xf32> to vector<1x1x1xf32>
    %33 = vector.extract %32[0, 0, 0] : f32 from vector<1x1x1xf32>
    %34 = vector.broadcast %33 : f32 to vector<1x8x128xf32>
    %c0_13 = arith.constant 0 : index
    %c0_14 = arith.constant 0 : index
    %c0_15 = arith.constant 0 : index
    %35 = vector.load %arg4[%c0_13, %c0_14, %c0_15] : memref<1x8x128xf32, #tpu.memory_space<vmem>>, vector<1x8x128xf32>
    tpu.vector_store %arg4[%c0_13, %c0_14, %c0_15], %34 {strides = array<i32>} : memref<1x8x128xf32, #tpu.memory_space<vmem>>, vector<1x8x128xf32>,
    %36 = vector.shape_cast %29 : vector<8x1xf32> to vector<1x8x1xf32>
    %cst_16 = arith.constant dense<0.000000e+00> : vector<1xf32>
    %37 = vector.multi_reduction <add>, %36, %cst_16 [1, 2] : vector<1x8x1xf32> to vector<1xf32>
    %38 = vector.shape_cast %37 : vector<1xf32> to vector<1x1x1xf32>
    %39 = vector.extract %38[0, 0, 0] : f32 from vector<1x1x1xf32>
    %40 = vector.broadcast %39 : f32 to vector<1x8x128xf32>
    %c0_17 = arith.constant 0 : index
    %c0_18 = arith.constant 0 : index
    %c0_19 = arith.constant 0 : index
    %41 = vector.load %arg5[%c0_17, %c0_18, %c0_19] : memref<1x8x128xf32, #tpu.memory_space<vmem>>, vector<1x8x128xf32>
    tpu.vector_store %arg5[%c0_17, %c0_18, %c0_19], %40 {strides = array<i32>} : memref<1x8x128xf32, #tpu.memory_space<vmem>>, vector<1x8x128xf32>,
    return
  }
  func.func @transform_0(%arg0: i32) -> (i32, i32) {
    %c0_i32 = arith.constant 0 : i32
    %c0_i32_0 = arith.constant 0 : i32
    return %arg0, %c0_i32 : i32, i32
  }
  func.func @transform_1(%arg0: i32) -> (i32, i32) {
    %c0_i32 = arith.constant 0 : i32
    %c0_i32_0 = arith.constant 0 : i32
    return %arg0, %c0_i32 : i32, i32
  }
  func.func @transform_2(%arg0: i32) -> (i32, i32) {
    %c0_i32 = arith.constant 0 : i32
    %c0_i32_0 = arith.constant 0 : i32
    return %arg0, %c0_i32 : i32, i32
  }
  func.func @transform_3(%arg0: i32) -> (i32, i32, i32) {
    %c0_i32 = arith.constant 0 : i32
    %c0_i32_0 = arith.constant 0 : i32
    %c0_i32_1 = arith.constant 0 : i32
    return %arg0, %c0_i32, %c0_i32_0 : i32, i32, i32
  }
  func.func @transform_4(%arg0: i32) -> (i32, i32, i32) {
    %c0_i32 = arith.constant 0 : i32
    %c0_i32_0 = arith.constant 0 : i32
    %c0_i32_1 = arith.constant 0 : i32
    return %arg0, %c0_i32, %c0_i32_0 : i32, i32, i32
  }
}

</mosaic_0001>

<bundles_post_ra>
// kernel: tpu_custom_call.1
= control target key start
LH: loop header
LB: loop body
LE: loop exit
PB: predicated region body
PF: predicated region fallthrough
CT: control target
= control target key end

     0   :  { %10 = vsyncpa [#allocation3], 0  ;;  %s293_s0 = inlined_call_operand.vmem [shape: f32[8,128], index: 0, kind: input, shape index: {}]   ;;  %s294_s1 = inlined_call_operand.vmem [shape: s32[8,1], index: 1, kind: input, shape index: {}]   ;;  %s295_s2 = inlined_call_operand.hbm [shape: f32[8,128], index: 2, kind: input, shape index: {}]   ;;  %s296_s3 = inlined_call_operand.hbm [shape: f32[1,8,128], index: 3, kind: output, shape index: {0}]   ;;  %s297_s4 = inlined_call_operand.hbm [shape: f32[1,8,128], index: 4, kind: output, shape index: {1}]  }
   0x1   :  { %11 = vsyncpa [#allocation4], 0 }
   0x2   :  { %12 = vsyncpa [#allocation7], 0  ;;  %s22_s17 = sshll.u32 %s295_s2, 4  ;;  %s249_s18 = smov [#allocation2]   ;;  %s23_s17 = int_to_ptr.hbm [resolvable:$true] %s22_s17 }
   0x3   :  { %s24_s19 = sshll.u32 %s249_s18, 4  ;;  %s25_s19 = int_to_ptr.vmem [resolvable:$true] %s24_s19 }
   0x4   :  { %27 = dma.hbm_to_vmem [thread:$0]  %s23_s17, 128, %s25_s19, [#allocation3]  }
   0x5   :  { %243 = dma.done.wait [#allocation3], 128  }
   0x6   :  { %244 = vsyncadd [#allocation3], 4294967168  ;;  %v250_v0 = vmov 0   ;;  %v32_v1 = vld [vmem:[%s293_s0] sm:$0xff]  ;;  %v42_v23 = vlaneseq  ;;  %vm77_vm9 = vcmask 7168   ;;  %s251_s0 = smov [#allocation5]  }
   0x7   :  { %162 = vset.pattern.permute.xlu0 %v250_v0  ;;  %v53_v2 = vld [vmem:[#allocation2] sm:$0xff]  ;;  %s109_s25 = sshll.u32 %s296_s3, 4  ;;  %s252_s26 = smov [#allocation6]   ;;  %s110_s25 = int_to_ptr.hbm [resolvable:$true] %s109_s25 }
   0x8   :  { %33 = vmax.xlane.f32.xlu0 %v32_v1  ;;  %163 = vrsqrt.f32 %v53_v2  ;;  %v137_v9 = vand.u32 2147483647, %v53_v2  ;;  %vm146_vm0 = vcmp.eq.f32.partialorder %v53_v2, inf  ;;  %v149_v10 = vand.u32 2147483648, %v53_v2  ;;  %v44_v11 = vld [vmem:[%s294_s1] sm:$0xff]  ;;  %s107_s1 = sshll.u32 %s251_s0, 4  ;;  %s108_s1 = int_to_ptr.vmem [resolvable:$true] %s107_s1 }
   0x9   :  { %vm135_vm1 = vcmp.eq.f32.partialorder %v53_v2, 0.0  ;;  %vm136_vm2 = vcmp.lt.f32.partialorder %v53_v2, 0.0  ;;  %v43_v24 = vand.u32 127, %v42_v23  ;;  %s118_s27 = sshll.u32 %s252_s26, 4  ;;  %s120_s30 = sshll.u32 %s297_s4, 4  ;;  %s119_s27 = int_to_ptr.vmem [resolvable:$true] %s118_s27  ;;  %s121_s30 = int_to_ptr.hbm [resolvable:$true] %s120_s30 }
   0xa   :  { %vm138_vm3 = vcmp.eq.f32.partialorder %v137_v9, inf }
   0xe   :  { %v164_v3 = vpop.eup %163 }
   0xf   :  { %v140_v4 = vmul.f32 %v164_v3, %v53_v2 }
  0x11   :  { %v141_v5 = vmul.f32 %v164_v3, %v140_v4 }
  0x13   :  { %v142_v6 = vmul.f32 0.5, %v141_v5 }
  0x15   :  { %v143_v7 = vsub.f32 1.5, %v142_v6 }
  0x17   :  { %v144_v8 = vmul.f32 %v164_v3, %v143_v7 }
  0x19   :  { %v145_v12 = vmul.f32 %v144_v8, %v53_v2 }
  0x1b   :  { %v147_v13 = vsel %vm146_vm0, %v53_v2, %v145_v12 }
  0x1c   :  { %46 = vperm.xlu0 %162, %v44_v11   ;;  %v150_v14 = vsel %vm135_vm1, %v149_v10, %v147_v13 }
  0x1d   :  { %v151_v15 = vsel %vm136_vm2, nan, %v150_v14 }
  0x1e   :  { %v152_v16 = vsel %vm135_vm1, 0.0, %v151_v15 }
  0x1f   :  { %v153_v17 = vsel %vm138_vm3, inf, %v152_v16 }
  0x20   :  { %55 = vadd.xlane.f32.xlu1 %v153_v17 }
  0x7b   :  { %v34_v18 = vpop.xlane.xlu0 %33 }
  0x7c   :  { %v35_v19 = vsub.f32 %v32_v1, %v34_v18 }
  0x7e   :  { %v36_v20 = vmul.f32 1.442695, %v35_v19  ;;  %v57_v21 = vmul.f32 %v153_v17, %v35_v19 }
  0x80   :  { %165 = vpow2.f32 %v36_v20  ;;  %58 = vadd.xlane.f32.xlu2 %v57_v21 }
  0x86   :  { %v166_v22 = vpop.eup %165 }
  0x87   :  { %38 = vadd.xlane.f32.xlu1 %v166_v22 }
  0x8e   :  { %v47_v25 = vpop.permute.xlu0 %46 }
  0x8f   :  { %vm48_vm4 = vcmp.eq.s32.totalorder %v43_v24, %v47_v25 }
  0x90   :  { %v49_v26 = vsel %vm48_vm4, %v35_v19, 0.0 }
  0x91   :  { %50 = vadd.xlane.f32.xlu2 %v49_v26 }
  0x93   :  { %v56_v27 = vpop.xlane.xlu1 %55 }
  0x94   :  { %v60_v28 = vmax.f32 %v56_v27, 1e-30 }
  0x96   :  { %167 = vrcp.f32 %v60_v28  ;;  %vm66_vm5 = vweird.f32 %v60_v28  ;;  %v72_v33 = vand.u32 2147483648, %v60_v28  ;;  %v70_v35 = vand.u32 2147483647, %v60_v28 }
  0x98   :  { %v73_v37 = vor.u32 1.1754944e-38, %v72_v33  ;;  %vm71_vm8 = vcmp.eq.f32.partialorder %v70_v35, 8.507059e+37 }
  0x9c   :  { %v168_v29 = vpop.eup %167 }
  0x9d   :  { %v62_v30 = vmul.f32 %v168_v29, %v60_v28  ;;  %vm67_vm6 = vweird.f32 %v168_v29 }
  0x9e   :  { %vm68_vm7 = vmor %vm66_vm5, %vm67_vm6 }
  0x9f   :  { %v63_v31 = vsub.f32 1.0, %v62_v30 }
  0xa1   :  { %v64_v32 = vmul.f32 %v168_v29, %v63_v31 }
  0xa3   :  { %v65_v34 = vadd.f32 %v168_v29, %v64_v32 }
  0xa5   :  { %v69_v38 = vsel %vm68_vm7, %v168_v29, %v65_v34 }
  0xa6   :  { %v74_v40 = vsel %vm71_vm8, %v73_v37, %v69_v38 }
  0xf3   :  { %v59_v39 = vpop.xlane.xlu2 %58 }
  0xf4   :  { %v75_v42 = vmul.f32 %v74_v40, %v59_v39 }
  0xfa   :  { %v39_v36 = vpop.xlane.xlu1 %38 }
  0xfb   :  { %169 = vlog2.f32 %v39_v36 }
 0x101   :  { %v170_v41 = vpop.eup %169 }
 0x102   :  { %v41_v43 = vmul.f32 0.6931472, %v170_v41 }
 0x104   :  { %v51_v44 = vpop.xlane.xlu2 %50  ;;  %v76_v45 = vsub.f32 %v41_v43, %v75_v42 }
 0x105   :  { %v52_v46 = vsub.f32 %v41_v43, %v51_v44 }
 0x106   :  { %v90_v47 = vsel %vm77_vm9, %v76_v45, 0.0 }
 0x107   :  { %91 = vadd.xlane.f32.xlu2 %v90_v47  ;;  %v78_v48 = vsel %vm77_vm9, %v52_v46, 0.0 }
 0x108   :  { %79 = vadd.xlane.f32.xlu1 %v78_v48 }
 0x17a   :  { %v92_v49 = vpop.xlane.xlu2 %91 }
 0x17b   :  { %v93_v50 = vrot.slane %v92_v49, 4  ;;  %v80_v51 = vpop.xlane.xlu1 %79 }
 0x17c   :  { %v81_v52 = vrot.slane %v80_v51, 4 }
 0x17d   :  { %v94_v53 = vadd.f32 %v93_v50, %v92_v49 }
 0x17e   :  { %v82_v54 = vadd.f32 %v81_v52, %v80_v51 }
 0x17f   :  { %v95_v55 = vrot.slane %v94_v53, 2 }
 0x180   :  { %v83_v56 = vrot.slane %v82_v54, 2 }
 0x181   :  { %v96_v57 = vadd.f32 %v95_v55, %v94_v53 }
 0x182   :  { %v84_v58 = vadd.f32 %v83_v56, %v82_v54 }
 0x183   :  { %v97_v59 = vrot.slane %v96_v57, 1 }
 0x184   :  { %v85_v60 = vrot.slane %v84_v58, 1 }
 0x185   :  { %v98_v61 = vadd.f32 %v97_v59, %v96_v57 }
 0x186   :  { %v86_v62 = vadd.f32 %v85_v60, %v84_v58 }
 0x188   :  { %154 = vpush %v86_v62 }
 0x189   :  { %156 = vpush %v98_v61 }
 0x1b9   :  { %s155_s5 = spop %154 }
 0x1ba   :  { %v88_v63 = vstv %s155_s5  ;;  %s157_s6 = spop %156 }
 0x1bb   :  { %89 = vst [vmem:[#allocation5] sm:$0xff] %v88_v63  ;;  %v100_v0 = vstv %s157_s6 }
 0x1bc   :  { %101 = vst [vmem:[#allocation6] sm:$0xff] %v100_v0  ;;  %112 = dma.vmem_to_hbm [thread:$0]  %s108_s1, 128, %s110_s25, [#allocation4]  }
 0x1bd   :  { %123 = dma.vmem_to_hbm [thread:$0]  %s119_s27, 128, %s121_s30, [#allocation7]  }
 0x1be   :  { %245 = dma.done.wait [#allocation4], 128  }
 0x1bf   :  { %246 = vsyncadd [#allocation4], 4294967168 }
 0x1c0   :  { %247 = dma.done.wait [#allocation7], 128  }
 0x1c1   :  { %248 = vsyncadd [#allocation7], 4294967168 }
 0x1c2   :  { %132 = vsyncpa [#allocation3], 1 }
 0x1c3   :  { %133 = vsyncpa [#allocation4], 1 }
 0x1c4   :  { %134 = vsyncpa [#allocation7], 1 }

</bundles_post_ra>
